<compile_context>
chip_gen: v7x
topology: tpu7x:2x2x1
jax: 0.10.0
libtpu: 0.0.40
codegen_flags: <defaults>
</compile_context>

<pallas_src>
import functools

import jax
import jax.numpy as jnp
from jax import lax
from jax.experimental import pallas as pl
from jax.experimental.pallas import tpu as pltpu

EPS = 1e-5
LANE = 128


def _round_up(x, m):
    return ((x + m - 1) // m) * m


# ---------------------------------------------------------------------------
# Kernel: one batch tile (TB rows) through the whole (BN-folded) MLP.
# ---------------------------------------------------------------------------
def _mlp_kernel(num_hidden,  # static
                x_ref,                       # (TB, D_in)   f32
                w_in_ref, b_in_ref,          # (D_in, Hp) bf16, (1, Hp) f32
                w_h_ref, b_h_ref,            # (nh, Hp, Hp) bf16, (nh, 1, Hp) f32
                w_out_ref, b_out_ref,        # (Hp, Op) bf16, (1, Op) f32
                o_ref):                      # (TB, Op) f32
    x = x_ref[...]

    # ---- input layer (BN already folded into W/b) + ReLU -------------------
    h = jnp.dot(x.astype(jnp.bfloat16), w_in_ref[...],
                preferred_element_type=jnp.float32)
    h = jnp.maximum(h + b_in_ref[...], 0.0)
    # dropout -> identity (eval mode)

    # ---- hidden residual blocks --------------------------------------------
    def layer(i, h):
        z = jnp.dot(h.astype(jnp.bfloat16), w_h_ref[i],
                    preferred_element_type=jnp.float32)
        z = jnp.maximum(z + b_h_ref[i], 0.0)
        return z + h                          # residual add (dropout = identity)

    if num_hidden <= 4:
        # shallow: static unroll is cheap and gives the scheduler full view
        for i in range(num_hidden):
            h = layer(i, h)
    else:
        # deep: keep vreg live ranges bounded
        h = lax.fori_loop(0, num_hidden, layer, h, unroll=2)

    # ---- output layer --------------------------------------------------------
    out = jnp.dot(h.astype(jnp.bfloat16), w_out_ref[...],
                  preferred_element_type=jnp.float32)
    o_ref[...] = out + b_out_ref[...]


# ---------------------------------------------------------------------------
# Parameter prep: fold eval-mode BN into Linear, transpose, pad, cast to bf16.
# ---------------------------------------------------------------------------
def _fold_bn(w, b, gamma, beta, mean, var, eps=EPS):
    """w: (out, in), b/gamma/beta/mean/var: (out,) -> folded (out, in), (out,)."""
    scale = gamma * lax.rsqrt(var + eps)
    return w * scale[:, None], (b - mean) * scale + beta


def prepare_params(raw, num_layers):
    """Fold BN, transpose to (in, out), pad features to LANE multiples, cast."""
    assert num_layers >= 2
    num_hidden = num_layers - 1
    H, D_in = raw["w_in"].shape
    O = raw["w_out"].shape[0]
    Hp, Op = _round_up(H, LANE), _round_up(O, LANE)

    w_in, b_in = _fold_bn(raw["w_in"], raw["b_in"], raw["g_in"],
                          raw["be_in"], raw["m_in"], raw["v_in"])
    w_in_p = jnp.zeros((D_in, Hp), jnp.float32).at[:, :H].set(w_in.T)
    b_in_p = jnp.zeros((1, Hp), jnp.float32).at[0, :H].set(b_in)

    w_h_list, b_h_list = [], []
    for i in range(num_hidden):
        w, b = _fold_bn(raw["w_h"][i], raw["b_h"][i], raw["g_h"][i],
                        raw["be_h"][i], raw["m_h"][i], raw["v_h"][i])
        w_h_list.append(jnp.zeros((Hp, Hp), jnp.float32).at[:H, :H].set(w.T))
        b_h_list.append(jnp.zeros((1, Hp), jnp.float32).at[0, :H].set(b))
    w_h_p = jnp.stack(w_h_list)               # (nh, Hp, Hp)
    b_h_p = jnp.stack(b_h_list)               # (nh, 1, Hp)

    w_out_p = jnp.zeros((Hp, Op), jnp.float32).at[:H, :O].set(raw["w_out"].T)
    b_out_p = jnp.zeros((1, Op), jnp.float32).at[0, :O].set(raw["b_out"])

    packed = {
        "w_in": w_in_p.astype(jnp.bfloat16), "b_in": b_in_p,
        "w_h": w_h_p.astype(jnp.bfloat16),   "b_h": b_h_p,
        "w_out": w_out_p.astype(jnp.bfloat16), "b_out": b_out_p,
    }
    return packed


# ---------------------------------------------------------------------------
# Wrapper: batch grid + resident weights.
# ---------------------------------------------------------------------------
def net_forward(x, packed, num_layers, output_size, *, block_b=128):
    assert num_layers >= 2
    B, D_in = x.shape
    num_hidden = num_layers - 1
    Hp = packed["w_in"].shape[1]
    Op = packed["w_out"].shape[1]

    # batch tile: multiple of 8 (f32 sublane), up to block_b rows
    TB = block_b if B >= block_b else _round_up(B, 8)
    pB = _round_up(B, TB)
    if pB != B:
        x = jnp.pad(x, ((0, pB - B), (0, 0)))

    grid = (pB // TB,)
    kernel = functools.partial(_mlp_kernel, num_hidden)

    # --- scheduler hints -----------------------------------------------------
    flops = 2 * pB * (D_in * Hp + num_hidden * Hp * Hp + Hp * Op)
    param_bytes = sum(int(v.size) * v.dtype.itemsize for v in packed.values())
    bytes_accessed = int(pB * D_in * 4 + param_bytes + pB * Op * 4)
    cost = pl.CostEstimate(flops=int(flops), transcendentals=0,
                           bytes_accessed=bytes_accessed)

    # --- explicit VMEM budget (weights double-buffered by default + acts) ----
    act_bytes = 2 * 2 * TB * (D_in + Op) * 4 + 6 * TB * Hp * 4
    vmem_limit = int(min(64 << 20, max(2 * param_bytes + act_bytes + (4 << 20),
                                       32 << 20)))
    # TODO(synk): for very large hidden sizes on v7x (64 MiB VMEM), add a
    # sequential "arbitrary" grid axis over the hidden-layer index to stream
    # one layer's weights at a time instead of keeping all layers resident.

    out = pl.pallas_call(
        kernel,
        out_shape=jax.ShapeDtypeStruct((pB, Op), jnp.float32),
        grid=grid,
        in_specs=[
            pl.BlockSpec((TB, D_in), lambda i: (i, 0)),               # x (tiled)
            pl.BlockSpec((D_in, Hp), lambda i: (0, 0)),               # w_in
            pl.BlockSpec((1, Hp), lambda i: (0, 0)),                  # b_in
            pl.BlockSpec((num_hidden, Hp, Hp), lambda i: (0, 0, 0)),  # w_h
            pl.BlockSpec((num_hidden, 1, Hp), lambda i: (0, 0, 0)),   # b_h
            pl.BlockSpec((Hp, Op), lambda i: (0, 0)),                 # w_out
            pl.BlockSpec((1, Op), lambda i: (0, 0)),                  # b_out
        ],
        out_specs=pl.BlockSpec((TB, Op), lambda i: (i, 0)),
        compiler_params=pltpu.CompilerParams(
            dimension_semantics=("parallel",),      # megacore on v7x
            vmem_limit_bytes=vmem_limit),
        cost_estimate=cost,
    )(x, packed["w_in"], packed["b_in"], packed["w_h"], packed["b_h"],
      packed["w_out"], packed["b_out"])

    return out[:B, :output_size]


# ---------------------------------------------------------------------------
# Synthetic params (PyTorch layout: Linear weight (out, in), bias (out,)).
# ---------------------------------------------------------------------------
def init_params(key, input_size, hidden_size, output_size, num_layers):
    nh = num_layers - 1
    ks = jax.random.split(key, 14)

    def rnd(k, shape, scale=0.1):
        return (scale * jax.random.normal(k, shape)).astype(jnp.float32)

    return {
        "w_in": rnd(ks[0], (hidden_size, input_size)),
        "b_in": rnd(ks[1], (hidden_size,)),
        "g_in": 1.0 + rnd(ks[2], (hidden_size,), 0.05),
        "be_in": rnd(ks[3], (hidden_size,), 0.05),
        "m_in": rnd(ks[4], (hidden_size,), 0.05),
        "v_in": 1.0 + jnp.abs(rnd(ks[5], (hidden_size,), 0.05)),
        "w_h": rnd(ks[6], (nh, hidden_size, hidden_size)),
        "b_h": rnd(ks[7], (nh, hidden_size)),
        "g_h": 1.0 + rnd(ks[8], (nh, hidden_size), 0.05),
        "be_h": rnd(ks[9], (nh, hidden_size), 0.05),
        "m_h": rnd(ks[10], (nh, hidden_size), 0.05),
        "v_h": 1.0 + jnp.abs(rnd(ks[11], (nh, hidden_size), 0.05)),
        "w_out": rnd(ks[12], (output_size, hidden_size)),
        "b_out": rnd(ks[13], (output_size,)),
    }


def net_forward_ref(x, raw, num_layers):
    """Pure-JAX f32 reference with original (unfolded) eval-mode BN semantics."""
    def bn(h, g, be, m, v):
        return (h - m) * lax.rsqrt(v + EPS) * g + be

    h = x @ raw["w_in"].T + raw["b_in"]
    h = jnp.maximum(bn(h, raw["g_in"], raw["be_in"], raw["m_in"], raw["v_in"]), 0.0)
    for i in range(num_layers - 1):
        z = h @ raw["w_h"][i].T + raw["b_h"][i]
        z = jnp.maximum(bn(z, raw["g_h"][i], raw["be_h"][i],
                           raw["m_h"][i], raw["v_h"][i]), 0.0)
        h = z + h
    return h @ raw["w_out"].T + raw["b_out"]


if __name__ == "__main__":
    # Small config consistent with the module's constructor.
    config = dict(input_size=16, hidden_size=32, output_size=1,
                  dropout_rate=0.1, num_layers=3)
    B = 8

    key = jax.random.PRNGKey(0)
    kx, kp = jax.random.split(key)

    x = jax.random.normal(kx, (B, config["input_size"]), dtype=jnp.float32)
    raw = init_params(kp, config["input_size"], config["hidden_size"],
                      config["output_size"], config["num_layers"])

    packed = prepare_params(raw, config["num_layers"])
    out = net_forward(x, packed, config["num_layers"], config["output_size"])
    out = jax.block_until_ready(out)

    ref = net_forward_ref(x, raw, config["num_layers"])
    assert out.shape == (B, config["output_size"])
    # bf16 matmul inputs (f32 accumulation) -> loosened tolerance vs f32 ref.
    err = float(jnp.max(jnp.abs(out - ref)))
    assert jnp.allclose(out, ref, atol=2e-2, rtol=2e-2), f"mismatch vs ref: {err}"

    print("KERNEL_OK")
</pallas_src>

<mosaic_0001>
module attributes {stable_mosaic.version = 11 : i64} {
  func.func @_mlp_kernel(%arg0: i32, %arg1: memref<8x16xf32, #tpu.memory_space<vmem>>, %arg2: memref<16x128xbf16, #tpu.memory_space<vmem>>, %arg3: memref<1x128xf32, #tpu.memory_space<vmem>>, %arg4: memref<2x128x128xbf16, #tpu.memory_space<vmem>>, %arg5: memref<2x1x128xf32, #tpu.memory_space<vmem>>, %arg6: memref<128x128xbf16, #tpu.memory_space<vmem>>, %arg7: memref<1x128xf32, #tpu.memory_space<vmem>>, %arg8: memref<8x128xf32, #tpu.memory_space<vmem>>) attributes {dimension_semantics = [#tpu.dimension_semantics<parallel>], iteration_bounds = array<i64: 1>, scalar_prefetch = 0 : i64, scratch_operands = 0 : i64, tpu.core_type = #tpu.core_type<tc>, window_params = [{transform_indices = @transform_0, window_bounds = array<i64: 8, 16>}, {pipeline_mode = #tpu.pipeline_mode<synchronous>, transform_indices = @transform_1, window_bounds = array<i64: 16, 128>}, {pipeline_mode = #tpu.pipeline_mode<synchronous>, transform_indices = @transform_2, window_bounds = array<i64: 1, 128>}, {pipeline_mode = #tpu.pipeline_mode<synchronous>, transform_indices = @transform_3, window_bounds = array<i64: 2, 128, 128>}, {pipeline_mode = #tpu.pipeline_mode<synchronous>, transform_indices = @transform_4, window_bounds = array<i64: 2, 1, 128>}, {pipeline_mode = #tpu.pipeline_mode<synchronous>, transform_indices = @transform_5, window_bounds = array<i64: 128, 128>}, {pipeline_mode = #tpu.pipeline_mode<synchronous>, transform_indices = @transform_6, window_bounds = array<i64: 1, 128>}, {transform_indices = @transform_7, window_bounds = array<i64: 8, 128>}]} {
    %c0 = arith.constant 0 : index
    %c0_0 = arith.constant 0 : index
    %0 = vector.load %arg1[%c0, %c0_0] : memref<8x16xf32, #tpu.memory_space<vmem>>, vector<8x16xf32>
    %1 = arith.truncf %0 : vector<8x16xf32> to vector<8x16xbf16>
    %c0_1 = arith.constant 0 : index
    %c0_2 = arith.constant 0 : index
    %2 = vector.load %arg2[%c0_1, %c0_2] : memref<16x128xbf16, #tpu.memory_space<vmem>>, vector<16x128xbf16>
    %cst = arith.constant dense<0.000000e+00> : vector<8x128xf32>
    %3 = tpu.matmul %1, %2, %cst {dimension_numbers = #tpu.dot_dimension_numbers<[1], [0], [0], [1], [0, 0, 1, 1], [], []>} : vector<8x16xbf16>, vector<16x128xbf16>, vector<8x128xf32> -> vector<8x128xf32>
    %c0_3 = arith.constant 0 : index
    %c0_4 = arith.constant 0 : index
    %4 = vector.load %arg3[%c0_3, %c0_4] : memref<1x128xf32, #tpu.memory_space<vmem>>, vector<1x128xf32>
    %5 = vector.broadcast %4 : vector<1x128xf32> to vector<8x128xf32>
    %6 = arith.addf %3, %5 : vector<8x128xf32>
    %cst_5 = arith.constant 0.000000e+00 : f32
    %7 = vector.broadcast %cst_5 : f32 to vector<8x128xf32>
    %8 = arith.maximumf %6, %7 : vector<8x128xf32>
    %9 = arith.truncf %8 : vector<8x128xf32> to vector<8x128xbf16>
    %c0_6 = arith.constant 0 : index
    %c0_7 = arith.constant 0 : index
    %c0_8 = arith.constant 0 : index
    %10 = vector.load %arg4[%c0_6, %c0_7, %c0_8] : memref<2x128x128xbf16, #tpu.memory_space<vmem>>, vector<1x128x128xbf16>
    %11 = vector.shape_cast %10 : vector<1x128x128xbf16> to vector<128x128xbf16>
    %cst_9 = arith.constant dense<0.000000e+00> : vector<8x128xf32>
    %12 = tpu.matmul %9, %11, %cst_9 {dimension_numbers = #tpu.dot_dimension_numbers<[1], [0], [0], [1], [0, 0, 1, 1], [], []>} : vector<8x128xbf16>, vector<128x128xbf16>, vector<8x128xf32> -> vector<8x128xf32>
    %c0_10 = arith.constant 0 : index
    %c0_11 = arith.constant 0 : index
    %c0_12 = arith.constant 0 : index
    %13 = vector.load %arg5[%c0_10, %c0_11, %c0_12] : memref<2x1x128xf32, #tpu.memory_space<vmem>>, vector<1x1x128xf32>
    %14 = vector.shape_cast %13 : vector<1x1x128xf32> to vector<1x128xf32>
    %15 = vector.broadcast %14 : vector<1x128xf32> to vector<8x128xf32>
    %16 = arith.addf %12, %15 : vector<8x128xf32>
    %cst_13 = arith.constant 0.000000e+00 : f32
    %17 = vector.broadcast %cst_13 : f32 to vector<8x128xf32>
    %18 = arith.maximumf %16, %17 : vector<8x128xf32>
    %19 = arith.addf %18, %8 : vector<8x128xf32>
    %20 = arith.truncf %19 : vector<8x128xf32> to vector<8x128xbf16>
    %c1 = arith.constant 1 : index
    %c0_14 = arith.constant 0 : index
    %c0_15 = arith.constant 0 : index
    %21 = vector.load %arg4[%c1, %c0_14, %c0_15] : memref<2x128x128xbf16, #tpu.memory_space<vmem>>, vector<1x128x128xbf16>
    %22 = vector.shape_cast %21 : vector<1x128x128xbf16> to vector<128x128xbf16>
    %cst_16 = arith.constant dense<0.000000e+00> : vector<8x128xf32>
    %23 = tpu.matmul %20, %22, %cst_16 {dimension_numbers = #tpu.dot_dimension_numbers<[1], [0], [0], [1], [0, 0, 1, 1], [], []>} : vector<8x128xbf16>, vector<128x128xbf16>, vector<8x128xf32> -> vector<8x128xf32>
    %c1_17 = arith.constant 1 : index
    %c0_18 = arith.constant 0 : index
    %c0_19 = arith.constant 0 : index
    %24 = vector.load %arg5[%c1_17, %c0_18, %c0_19] : memref<2x1x128xf32, #tpu.memory_space<vmem>>, vector<1x1x128xf32>
    %25 = vector.shape_cast %24 : vector<1x1x128xf32> to vector<1x128xf32>
    %26 = vector.broadcast %25 : vector<1x128xf32> to vector<8x128xf32>
    %27 = arith.addf %23, %26 : vector<8x128xf32>
    %cst_20 = arith.constant 0.000000e+00 : f32
    %28 = vector.broadcast %cst_20 : f32 to vector<8x128xf32>
    %29 = arith.maximumf %27, %28 : vector<8x128xf32>
    %30 = arith.addf %29, %19 : vector<8x128xf32>
    %31 = arith.truncf %30 : vector<8x128xf32> to vector<8x128xbf16>
    %c0_21 = arith.constant 0 : index
    %c0_22 = arith.constant 0 : index
    %32 = vector.load %arg6[%c0_21, %c0_22] : memref<128x128xbf16, #tpu.memory_space<vmem>>, vector<128x128xbf16>
    %cst_23 = arith.constant dense<0.000000e+00> : vector<8x128xf32>
    %33 = tpu.matmul %31, %32, %cst_23 {dimension_numbers = #tpu.dot_dimension_numbers<[1], [0], [0], [1], [0, 0, 1, 1], [], []>} : vector<8x128xbf16>, vector<128x128xbf16>, vector<8x128xf32> -> vector<8x128xf32>
    %c0_24 = arith.constant 0 : index
    %c0_25 = arith.constant 0 : index
    %34 = vector.load %arg7[%c0_24, %c0_25] : memref<1x128xf32, #tpu.memory_space<vmem>>, vector<1x128xf32>
    %35 = vector.broadcast %34 : vector<1x128xf32> to vector<8x128xf32>
    %36 = arith.addf %33, %35 : vector<8x128xf32>
    %c0_26 = arith.constant 0 : index
    %c0_27 = arith.constant 0 : index
    %37 = vector.load %arg8[%c0_26, %c0_27] : memref<8x128xf32, #tpu.memory_space<vmem>>, vector<8x128xf32>
    tpu.vector_store %arg8[%c0_26, %c0_27], %36 {strides = array<i32>} : memref<8x128xf32, #tpu.memory_space<vmem>>, vector<8x128xf32>,
    return
  }
  func.func @transform_0(%arg0: i32) -> (i32, i32) {
    %c0_i32 = arith.constant 0 : i32
    %c0_i32_0 = arith.constant 0 : i32
    return %arg0, %c0_i32 : i32, i32
  }
  func.func @transform_1(%arg0: i32) -> (i32, i32) {
    %c0_i32 = arith.constant 0 : i32
    %c0_i32_0 = arith.constant 0 : i32
    %c0_i32_1 = arith.constant 0 : i32
    return %c0_i32, %c0_i32_0 : i32, i32
  }
  func.func @transform_2(%arg0: i32) -> (i32, i32) {
    %c0_i32 = arith.constant 0 : i32
    %c0_i32_0 = arith.constant 0 : i32
    %c0_i32_1 = arith.constant 0 : i32
    return %c0_i32, %c0_i32_0 : i32, i32
  }
  func.func @transform_3(%arg0: i32) -> (i32, i32, i32) {
    %c0_i32 = arith.constant 0 : i32
    %c0_i32_0 = arith.constant 0 : i32
    %c0_i32_1 = arith.constant 0 : i32
    %c0_i32_2 = arith.constant 0 : i32
    return %c0_i32, %c0_i32_0, %c0_i32_1 : i32, i32, i32
  }
  func.func @transform_4(%arg0: i32) -> (i32, i32, i32) {
    %c0_i32 = arith.constant 0 : i32
    %c0_i32_0 = arith.constant 0 : i32
    %c0_i32_1 = arith.constant 0 : i32
    %c0_i32_2 = arith.constant 0 : i32
    return %c0_i32, %c0_i32_0, %c0_i32_1 : i32, i32, i32
  }
  func.func @transform_5(%arg0: i32) -> (i32, i32) {
    %c0_i32 = arith.constant 0 : i32
    %c0_i32_0 = arith.constant 0 : i32
    %c0_i32_1 = arith.constant 0 : i32
    return %c0_i32, %c0_i32_0 : i32, i32
  }
  func.func @transform_6(%arg0: i32) -> (i32, i32) {
    %c0_i32 = arith.constant 0 : i32
    %c0_i32_0 = arith.constant 0 : i32
    %c0_i32_1 = arith.constant 0 : i32
    return %c0_i32, %c0_i32_0 : i32, i32
  }
  func.func @transform_7(%arg0: i32) -> (i32, i32) {
    %c0_i32 = arith.constant 0 : i32
    %c0_i32_0 = arith.constant 0 : i32
    return %arg0, %c0_i32 : i32, i32
  }
}

</mosaic_0001>

<bundles_post_ra>
// kernel: tpu_custom_call.1
= control target key start
LH: loop header
LB: loop body
LE: loop exit
PB: predicated region body
PF: predicated region fallthrough
CT: control target
= control target key end

     0   :  { %12 = vsyncpa [#allocation3], 0  ;;  %s944_s0 = inlined_call_operand.hbm [shape: f32[8,16], index: 0, kind: input, shape index: {}]   ;;  %s945_s1 = inlined_call_operand.hbm [shape: bf16[16,128], index: 1, kind: input, shape index: {}]   ;;  %s946_s2 = inlined_call_operand.vmem [shape: f32[1,128], index: 2, kind: input, shape index: {}]   ;;  %s947_s3 = inlined_call_operand.hbm [shape: bf16[2,128,128], index: 3, kind: input, shape index: {}]   ;;  %s948_s4 = inlined_call_operand.vmem [shape: f32[2,1,128], index: 4, kind: input, shape index: {}]   ;;  %s949_s5 = inlined_call_operand.hbm [shape: bf16[128,128], index: 5, kind: input, shape index: {}]   ;;  %s950_s6 = inlined_call_operand.vmem [shape: f32[1,128], index: 6, kind: input, shape index: {}]   ;;  %s951_s7 = inlined_call_operand.hbm [shape: f32[8,128], index: 7, kind: output, shape index: {}]  }
   0x1   :  { %13 = vsyncpa [#allocation6], 0 }
   0x2   :  { %14 = vsyncpa [#allocation9], 0 }
   0x3   :  { %15 = vsyncpa [#allocation4], 0  ;;  %s781_s24 = smov [#allocation5]   ;;  %s663_s28 = scalar_lea.hbm %s945_s1, 128 }
   0x4   :  { %s31_s25 = sshll.u32 %s781_s24, 4  ;;  %p664_p0 = scmp.ne.s32.totalorder %s945_s1, %s663_s28  ;;  %s32_s25 = int_to_ptr.vmem [resolvable:$true] %s31_s25 }
   0x5   :  { %p667_p1 = scmp.lt.u32.totalorder %s663_s28, %s945_s1 }
   0x7   :  { %p669_p2 = pnand %p667_p1, %p664_p0 }
   0x9   :  { %672 = shalt.err (!%p669_p2)
}
   0xa   :  { %s673_s10 = scalar_lea.vmem %s32_s25, 128  ;;  %p678_p4 = scmp.lt.s32.totalorder %s32_s25, %s32_s25 }
   0xb   :  { %p674_p3 = scmp.ne.s32.totalorder %s32_s25, %s673_s10  ;;  %p679_p5 = scmp.lt.s32.totalorder %s673_s10, %s673_s10 }
   0xd   :  { %p680_p6 = por %p679_p5, %p678_p4 }
   0xf   :  { %p681_p7 = pnand %p680_p6, %p674_p3 }
  0x11   :  { %684 = shalt.err (!%p681_p7)
}
  0x12   :  { %s782_s11 = smov 64   ;;  %s783_s12 = smov 4  }
  0x13   :  { %37 = dma.hbm_to_vmem [thread:$0]  %s945_s1, 128, %s32_s25, [#allocation6], %s782_s11, %s782_s11, %s783_s12  }
  0x14   :  { %s784_s15 = smov [#allocation2]   ;;  %s785_s17 = smov [#allocation7]  }
  0x15   :  { %s22_s16 = sshll.u32 %s784_s15, 4  ;;  %s45_s18 = sshll.u32 %s785_s17, 4  ;;  %s23_s16 = int_to_ptr.vmem [resolvable:$true] %s22_s16  ;;  %s46_s18 = int_to_ptr.vmem [resolvable:$true] %s45_s18 }
  0x16   :  { %s685_s21 = scalar_lea.hbm %s944_s0, 128 }
  0x17   :  { %p686_p8 = scmp.ne.s32.totalorder %s944_s0, %s685_s21  ;;  %p689_p9 = scmp.lt.u32.totalorder %s685_s21, %s944_s0 }
  0x19   :  { %p691_p10 = pnand %p689_p9, %p686_p8 }
  0x1b   :  { %694 = shalt.err (!%p691_p10)
}
  0x1c   :  { %s695_s1 = scalar_lea.vmem %s23_s16, 128  ;;  %p700_p12 = scmp.lt.s32.totalorder %s23_s16, %s23_s16 }
  0x1d   :  { %p696_p11 = scmp.ne.s32.totalorder %s23_s16, %s695_s1  ;;  %p701_p13 = scmp.lt.s32.totalorder %s695_s1, %s695_s1 }
  0x1f   :  { %p702_p0 = por %p701_p13, %p700_p12 }
  0x21   :  { %p703_p1 = pnand %p702_p0, %p696_p11 }
  0x23   :  { %706 = shalt.err (!%p703_p1)
}
  0x24   :  { %25 = dma.hbm_to_vmem [thread:$0]  %s944_s0, 128, %s23_s16, [#allocation3]  }
  0x25   :  { %s707_s30 = scalar_lea.hbm %s947_s3, 2048 }
  0x26   :  { %p708_p2 = scmp.ne.s32.totalorder %s947_s3, %s707_s30  ;;  %p711_p3 = scmp.lt.u32.totalorder %s707_s30, %s947_s3 }
  0x28   :  { %p713_p4 = pnand %p711_p3, %p708_p2 }
  0x2a   :  { %716 = shalt.err (!%p713_p4)
}
  0x2b   :  { %s717_s14 = scalar_lea.vmem %s46_s18, 2048  ;;  %p722_p6 = scmp.lt.s32.totalorder %s46_s18, %s46_s18 }
  0x2c   :  { %p718_p5 = scmp.ne.s32.totalorder %s46_s18, %s717_s14  ;;  %p723_p7 = scmp.lt.s32.totalorder %s717_s14, %s717_s14 }
  0x2e   :  { %p724_p8 = por %p723_p7, %p722_p6 }
  0x30   :  { %p725_p9 = pnand %p724_p8, %p718_p5 }
  0x32   :  { %728 = shalt.err (!%p725_p9)
}
  0x33   :  { %51 = dma.hbm_to_vmem [thread:$0]  %s947_s3, 2048, %s46_s18, [#allocation6], %s782_s11, %s782_s11, %s783_s12  }
  0x34   :  { %s786_s16 = smov [#allocation8]   ;;  %s729_s21 = scalar_lea.hbm %s949_s5, 1024 }
  0x35   :  { %s59_s17 = sshll.u32 %s786_s16, 4  ;;  %p730_p10 = scmp.ne.s32.totalorder %s949_s5, %s729_s21  ;;  %s60_s17 = int_to_ptr.vmem [resolvable:$true] %s59_s17 }
  0x36   :  { %p733_p11 = scmp.lt.u32.totalorder %s729_s21, %s949_s5 }
  0x38   :  { %p735_p12 = pnand %p733_p11, %p730_p10 }
  0x3a   :  { %738 = shalt.err (!%p735_p12)
}
  0x3b   :  { %s739_s1 = scalar_lea.vmem %s60_s17, 1024  ;;  %p744_p0 = scmp.lt.s32.totalorder %s60_s17, %s60_s17 }
  0x3c   :  { %p740_p13 = scmp.ne.s32.totalorder %s60_s17, %s739_s1  ;;  %p745_p1 = scmp.lt.s32.totalorder %s739_s1, %s739_s1 }
  0x3e   :  { %p746_p2 = por %p745_p1, %p744_p0 }
  0x40   :  { %p747_p3 = pnand %p746_p2, %p740_p13 }
  0x42   :  { %750 = shalt.err (!%p747_p3)
}
  0x43   :  { %65 = dma.hbm_to_vmem [thread:$0]  %s949_s5, 1024, %s60_s17, [#allocation9], %s782_s11, %s782_s11, %s783_s12  }
  0x44   :  { %773 = dma.done.wait [#allocation3], 128  }
  0x45   :  { %774 = vsyncadd [#allocation3], 4294967168 }
  0x46   :  { %775 = dma.done.wait [#allocation6], 2176  }
  0x47   :  { %776 = vsyncadd [#allocation6], 4294965120 }
  0x48   :  { %777 = dma.done.wait [#allocation9], 1024  }
  0x49   :  { %778 = vsyncadd [#allocation9], 4294966272  ;;  %v787_v0 = vmov 0.0   ;;  %vm788_vm0 = vmmov 0   ;;  %v638_v1 = vld [vmem:[#allocation5] sm:$0xff]   ;;  %v81_v2 = vld [vmem:[#allocation2] sm:$0xff] }
  0x4a   :  { %563 = vmatprep.subr.bf16.mxu0 %v787_v0  ;;  %565 = vmatprep.mubr.msk.bf16.mxu0 %vm788_vm0, %v787_v0  ;;  %v82_v3 = vpack.c.bf16 %v81_v2, %v81_v2  ;;  %vm98_vm1 = vcmask 130048   ;;  %v639_v4 = vld [vmem:[#allocation7] sm:$0xff]   ;;  %v640_v5 = vld [vmem:[#allocation7 + $0x8] sm:$0xff]   ;;  %v641_v6 = vld [vmem:[#allocation7 + $0x10] sm:$0xff]   ;;  %s789_s30 = smov [#allocation10]  }
  0x4b   :  { %569 = vmatprep.subr.bf16.mxu1 %v787_v0  ;;  %585 = vmatprep.mubr.msk.bf16.mxu1 %vm788_vm0, %v787_v0  ;;  %v642_v7 = vld [vmem:[#allocation7 + $0x18] sm:$0xff]   ;;  %v643_v8 = vld [vmem:[#allocation7 + $0x20] sm:$0xff]   ;;  %v644_v9 = vld [vmem:[#allocation7 + $0x28] sm:$0xff]   ;;  %s492_s8 = sshll.u32 %s789_s30, 4  ;;  %s493_s8 = int_to_ptr.vmem [resolvable:$true] %s492_s8 }
  0x4c   :  { %564 = vmatpush3.bf16.msra.mxu0 %v638_v1  ;;  %570 = vmatpush3.bf16.msra.mxu1 %v639_v4  ;;  %v645_v10 = vld [vmem:[#allocation7 + $0x30] sm:$0xff]   ;;  %v646_v11 = vld [vmem:[#allocation7 + $0x38] sm:$0xff]   ;;  %v647_v12 = vld [vmem:[#allocation7 + $0x40] sm:$0xff]   ;;  %p756_p5 = scmp.lt.s32.totalorder %s493_s8, %s493_s8 }
  0x4d   :  { %589 = vmatprep.subr.bf16.mxu0 %v787_v0  ;;  %571 = vmatprep.subr.bf16.mxu1 %v787_v0  ;;  %v648_v13 = vld [vmem:[#allocation7 + $0x48] sm:$0xff]   ;;  %v649_v14 = vld [vmem:[#allocation7 + $0x50] sm:$0xff]   ;;  %v650_v15 = vld [vmem:[#allocation7 + $0x58] sm:$0xff]  }
  0x4e   :  { %v651_v16 = vld [vmem:[#allocation7 + $0x60] sm:$0xff]   ;;  %v652_v17 = vld [vmem:[#allocation7 + $0x68] sm:$0xff]   ;;  %v503_v18 = vld [vmem:[%s946_s2] ss:$0 sm:$0xff] }
  0x4f   :  { %566 = vmatmul.mubr.msk.bf16.vlgmr.msra.gmra.mrb[0].mxu0 %vm98_vm1, %v82_v3  ;;  %v653_v26 = vld [vmem:[#allocation7 + $0x70] sm:$0xff]   ;;  %v654_v27 = vld [vmem:[#allocation7 + $0x78] sm:$0xff]   ;;  %v655_v28 = vld [vmem:[#allocation8] sm:$0xff]  }
  0x50   :  { %605 = vmatprep.mubr.msk.bf16.mxu0 %vm788_vm0, %v787_v0  ;;  %572 = vmatpush3.bf16.msra.mxu1 %v640_v5  ;;  %v656_v29 = vld [vmem:[#allocation8 + $0x8] sm:$0xff]   ;;  %v657_v30 = vld [vmem:[#allocation8 + $0x10] sm:$0xff]   ;;  %v658_v31 = vld [vmem:[#allocation8 + $0x18] sm:$0xff]  }
  0x51   :  { %573 = vmatprep.subr.bf16.mxu1 %v787_v0  ;;  %590 = vmatpush3.bf16.msra.mxu0 %v647_v12  ;;  %v659_v32 = vld [vmem:[#allocation8 + $0x20] sm:$0xff]   ;;  %v660_v33 = vld [vmem:[#allocation8 + $0x28] sm:$0xff]   ;;  %v506_v34 = vld [vmem:[%s948_s4] ss:$0 sm:$0xff] }
  0x52   :  { %591 = vmatprep.subr.bf16.mxu0 %v787_v0  ;;  %v661_v43 = vld [vmem:[#allocation8 + $0x30] sm:$0xff]   ;;  %v662_v44 = vld [vmem:[#allocation8 + $0x38] sm:$0xff]  }
  0x53   :  { %v516_v45 = vld [vmem:[%s948_s4 + $0x1] ss:$0 sm:$0xff]  ;;  %v525_v54 = vld [vmem:[%s950_s6] ss:$0 sm:$0xff]  ;;  %s751_s4 = scalar_lea.vmem %s493_s8, 128 }
  0x54   :  { %574 = vmatpush3.bf16.msra.mxu1 %v641_v6  ;;  %p752_p4 = scmp.ne.s32.totalorder %s493_s8, %s751_s4  ;;  %p757_p6 = scmp.lt.s32.totalorder %s751_s4, %s751_s4 }
  0x55   :  { %575 = vmatprep.subr.bf16.mxu1 %v787_v0  ;;  %592 = vmatpush3.bf16.msra.mxu0 %v648_v13 }
  0x56   :  { %593 = vmatprep.subr.bf16.mxu0 %v787_v0  ;;  %p758_p7 = por %p757_p6, %p756_p5 }
  0x58   :  { %576 = vmatpush3.bf16.msra.mxu1 %v642_v7  ;;  %p759_p8 = pnand %p758_p7, %p752_p4 }
  0x59   :  { %577 = vmatprep.subr.bf16.mxu1 %v787_v0  ;;  %594 = vmatpush3.bf16.msra.mxu0 %v649_v14 }
  0x5a   :  { %595 = vmatprep.subr.bf16.mxu0 %v787_v0 }
  0x5c   :  { %578 = vmatpush3.bf16.msra.mxu1 %v643_v8 }
  0x5d   :  { %579 = vmatprep.subr.bf16.mxu1 %v787_v0  ;;  %596 = vmatpush3.bf16.msra.mxu0 %v650_v15 }
  0x5e   :  { %597 = vmatprep.subr.bf16.mxu0 %v787_v0 }
  0x60   :  { %580 = vmatpush3.bf16.msra.mxu1 %v644_v9 }
  0x61   :  { %581 = vmatprep.subr.bf16.mxu1 %v787_v0  ;;  %598 = vmatpush3.bf16.msra.mxu0 %v651_v16 }
  0x62   :  { %599 = vmatprep.subr.bf16.mxu0 %v787_v0 }
  0x64   :  { %582 = vmatpush3.bf16.msra.mxu1 %v645_v10 }
  0x65   :  { %583 = vmatprep.subr.bf16.mxu1 %v787_v0  ;;  %600 = vmatpush3.bf16.msra.mxu0 %v652_v17 }
  0x66   :  { %601 = vmatprep.subr.bf16.mxu0 %v787_v0 }
  0x68   :  { %584 = vmatpush3.bf16.msra.mxu1 %v646_v11 }
  0x69   :  { %609 = vmatprep.subr.bf16.mxu1 %v787_v0  ;;  %602 = vmatpush3.bf16.msra.mxu0 %v653_v26 }
  0x6a   :  { %603 = vmatprep.subr.bf16.mxu0 %v787_v0 }
  0x6d   :  { %604 = vmatpush3.bf16.msra.mxu0 %v654_v27 }
 0x122   :  { %v136_v19 = vpop.f32.mrb[0].mxu0 }
 0x123   :  { %v137_v20 = vadd.f32 %v503_v18, %v136_v19  ;;  %v567_v21 = vpop.f32.mrb[1].mxu0 }
 0x124   :  { %v139_v22 = vpop.f32.mrb[2].mxu0 }
 0x125   :  { %v142_v23 = vmax.f32 %v137_v20, 0.0  ;;  %v568_v24 = vpop.f32.mrb[3].mxu0 }
 0x127   :  { %v143_v25 = vpack.c.bf16 %v142_v23, %v142_v23 }
 0x129   :  { %586 = vmatmul.mubr.bf16.vlgmr.msra.gmra.mrb[0].mxu1 %v143_v25 }
 0x12a   :  { %625 = vmatprep.mubr.msk.bf16.mxu1 %vm788_vm0, %v787_v0  ;;  %610 = vmatpush3.bf16.msra.mxu1 %v655_v28 }
 0x12b   :  { %611 = vmatprep.subr.bf16.mxu1 %v787_v0 }
 0x12e   :  { %612 = vmatpush3.bf16.msra.mxu1 %v656_v29 }
 0x12f   :  { %613 = vmatprep.subr.bf16.mxu1 %v787_v0 }
 0x132   :  { %614 = vmatpush3.bf16.msra.mxu1 %v657_v30 }
 0x133   :  { %615 = vmatprep.subr.bf16.mxu1 %v787_v0 }
 0x136   :  { %616 = vmatpush3.bf16.msra.mxu1 %v658_v31 }
 0x137   :  { %617 = vmatprep.subr.bf16.mxu1 %v787_v0 }
 0x13a   :  { %618 = vmatpush3.bf16.msra.mxu1 %v659_v32 }
 0x13b   :  { %619 = vmatprep.subr.bf16.mxu1 %v787_v0 }
 0x13e   :  { %620 = vmatpush3.bf16.msra.mxu1 %v660_v33 }
 0x13f   :  { %621 = vmatprep.subr.bf16.mxu1 %v787_v0 }
 0x142   :  { %622 = vmatpush3.bf16.msra.mxu1 %v661_v43 }
 0x143   :  { %623 = vmatprep.subr.bf16.mxu1 %v787_v0 }
 0x146   :  { %624 = vmatpush3.bf16.msra.mxu1 %v662_v44 }
 0x1fc   :  { %v249_v35 = vpop.f32.mrb[0].mxu1 }
 0x1fd   :  { %v250_v36 = vadd.f32 %v506_v34, %v249_v35  ;;  %v587_v37 = vpop.f32.mrb[1].mxu1 }
 0x1fe   :  { %v252_v38 = vpop.f32.mrb[2].mxu1 }
 0x1ff   :  { %v255_v39 = vmax.f32 %v250_v36, 0.0  ;;  %v588_v40 = vpop.f32.mrb[3].mxu1 }
 0x201   :  { %v256_v41 = vadd.f32 %v255_v39, %v142_v23 }
 0x203   :  { %v257_v42 = vpack.c.bf16 %v256_v41, %v256_v41 }
 0x205   :  { %606 = vmatmul.mubr.bf16.vlgmr.msra.gmra.mrb[4].mxu0 %v257_v42 }
 0x2d8   :  { %v365_v46 = vpop.f32.mrb[4].mxu0 }
 0x2d9   :  { %v366_v47 = vadd.f32 %v516_v45, %v365_v46  ;;  %v607_v48 = vpop.f32.mrb[5].mxu0 }
 0x2da   :  { %v368_v49 = vpop.f32.mrb[6].mxu0 }
 0x2db   :  { %v371_v50 = vmax.f32 %v366_v47, 0.0  ;;  %v608_v51 = vpop.f32.mrb[7].mxu0 }
 0x2dd   :  { %v372_v52 = vadd.f32 %v371_v50, %v256_v41 }
 0x2df   :  { %v373_v53 = vpack.c.bf16 %v372_v52, %v372_v52 }
 0x2e1   :  { %626 = vmatmul.mubr.bf16.vlgmr.msra.gmra.mrb[4].mxu1 %v373_v53 }
 0x3b4   :  { %v479_v55 = vpop.f32.mrb[4].mxu1 }
 0x3b5   :  { %v480_v56 = vadd.f32 %v525_v54, %v479_v55  ;;  %v627_v57 = vpop.f32.mrb[5].mxu1 }
 0x3b6   :  { %v482_v58 = vpop.f32.mrb[6].mxu1 }
 0x3b7   :  { %485 = vst [vmem:[#allocation10] sm:$0xff] %v480_v56  ;;  %v628_v59 = vpop.f32.mrb[7].mxu1 }
 0x3b8   :  { %762 = shalt.err (!%p759_p8)
}
 0x3b9   :  { %s763_s6 = scalar_lea.hbm %s951_s7, 128 }
 0x3ba   :  { %p764_p9 = scmp.ne.s32.totalorder %s951_s7, %s763_s6  ;;  %p767_p10 = scmp.lt.u32.totalorder %s763_s6, %s951_s7 }
 0x3bc   :  { %p769_p11 = pnand %p767_p10, %p764_p9 }
 0x3be   :  { %772 = shalt.err (!%p769_p11)
}
 0x3bf   :  { %495 = dma.vmem_to_hbm [thread:$0]  %s493_s8, 128, %s951_s7, [#allocation4]  }
 0x3c0   :  { %779 = dma.done.wait [#allocation4], 128  }
 0x3c1   :  { %780 = vsyncadd [#allocation4], 4294967168 }
 0x3c2   :  { %499 = vsyncpa [#allocation3], 1 }
 0x3c3   :  { %500 = vsyncpa [#allocation6], 1 }
 0x3c4   :  { %501 = vsyncpa [#allocation9], 1 }
 0x3c5   :  { %502 = vsyncpa [#allocation4], 1 }

</bundles_post_ra>
